<compile_context>
chip_gen: v5e
topology: v5e:2x2
jax: 0.10.0
libtpu: 0.0.40
codegen_flags: <defaults>
</compile_context>

<pallas_src>
import functools

import jax
import jax.numpy as jnp
from jax.experimental import pallas as pl
from jax.experimental.pallas import tpu as pltpu

EPS = 1e-5                       # nn.BatchNorm1d default eps
_VMEM_LIMIT = 64 * 1024 * 1024   # scoped-VMEM ceiling (== v7x physical per-TC VMEM)
_TILE_BUDGET = 40 * 1024 * 1024  # per-step working-set budget (double-buffer headroom)


def _round_up(x, m):
    return ((x + m - 1) // m) * m


def _pad2d(a, rows, cols, dtype):
    """Cast + zero-pad, skipping the extra O(rows*cols) copy when already aligned."""
    r, c = a.shape
    a = a.astype(dtype)
    if (r, c) == (rows, cols):
        return a
    return jnp.zeros((rows, cols), dtype).at[:r, :c].set(a)


# ---------------- kernel 1: Linear  h = x @ W^T + b ----------------
def _linear_kernel(x_ref, w_ref, b_ref, h_ref):
    acc = jnp.dot(x_ref[...], w_ref[...], preferred_element_type=jnp.float32)
    h_ref[...] = (acc + b_ref[...]).astype(h_ref.dtype)


# ------ kernel 2: y = adj @ h (f32 scratch accumulator) + per-row-block BN partials ------
def _aggregate_kernel(adj_ref, h_ref, y_ref, stats_ref, acc_ref):
    k = pl.program_id(1)
    nk = pl.num_programs(1)

    @pl.when(k == 0)
    def _():
        acc_ref[...] = jnp.zeros_like(acc_ref)

    acc_ref[...] += jnp.dot(adj_ref[...], h_ref[...],
                            preferred_element_type=jnp.float32)

    @pl.when(k == nk - 1)
    def _():
        acc = acc_ref[...]
        # Direct slice stores (no concat/reshape relayout in the epilogue).
        stats_ref[0, 0:1, :] = jnp.sum(acc, axis=0, keepdims=True)
        stats_ref[0, 1:2, :] = jnp.sum(acc * acc, axis=0, keepdims=True)
        y_ref[...] = acc.astype(y_ref.dtype)   # bf16 hand-off; stats stay f32


# ------ kernel 3: BatchNorm1d (training-mode batch stats) + affine + ReLU ------
def _bn_relu_kernel(y_ref, stats_ref, gamma_ref, beta_ref, o_ref, *, inv_n):
    # Padded rows/cols contributed exactly 0 to sum/sumsq, so dividing by the true N
    # gives exact batch statistics.  One-pass E[y^2]-E[y]^2 in f32 is adequate here
    # (values are O(1) post-normalized-adjacency); clamp guards tiny negatives.
    totals = jnp.sum(stats_ref[...], axis=0)                    # (2, F)
    mean = totals[0:1, :] * inv_n                               # (1, F)
    var = jnp.maximum(totals[1:2, :] * inv_n - mean * mean, 0.0)
    rstd = jax.lax.rsqrt(var + EPS)                             # EUP slot
    y = y_ref[...].astype(jnp.float32)
    o_ref[...] = jnp.maximum((y - mean) * rstd * gamma_ref[...] + beta_ref[...], 0.0)


@functools.partial(jax.jit, static_argnames=("matmul_dtype",))
def gcn_layer(x, w, b, adj, gamma, beta, *, matmul_dtype=jnp.bfloat16):
    """GCNLayer forward: relu(batchnorm(adj @ (x @ W^T + b))).

    x: [N, Fin] f32, w: [Fout, Fin] (torch nn.Linear layout), b/gamma/beta: [Fout],
    adj: [N, N]. Returns [N, Fout] f32.
    """
    n, fin = x.shape
    fout = w.shape[0]
    f32 = jnp.float32

    # ---- TPU-friendly padding / tile selection ----
    fin_p = _round_up(fin, 128)      # lane-dense matmul K dim
    fout_p = _round_up(fout, 128)    # lane-dense output (avoids masked vst)

    if n < 128:
        n_pad = _round_up(n, 16)     # bf16 sublane packing
    elif n < 1024:
        n_pad = _round_up(n, 128)    # full-lane adj contraction dim
    else:
        n_pad = _round_up(n, 512)

    # Row tile: large, but keep nb >= 2 so v7x's two TensorCores both get work.
    tm = 512 if n_pad >= 1024 else n_pad
    nb = n_pad // tm

    # adj-contraction tile: whole row slab (tk = n_pad -> h fetched once, no revisit
    # loop) when it fits the per-step VMEM budget, else the largest slice that does.
    def _stage2_bytes(tk):
        return (2 * tm * tk * 2            # adj tile, double-buffered bf16
                + 2 * tk * fout_p * 2      # h tile (conservatively double-buffered)
                + 2 * tm * fout_p * 2      # y bf16 output, double-buffered
                + tm * fout_p * 4          # f32 accumulator scratch
                + 2 * 2 * fout_p * 4)      # stats output

    tk = None
    for cand in (n_pad, 8192, 4096, 2048, 1024, 512, 256, 128):
        if cand <= n_pad and n_pad % cand == 0 and _stage2_bytes(cand) <= _TILE_BUDGET:
            tk = cand
            break
    if tk is None:
        tk = 128 if n_pad % 128 == 0 else n_pad
    nk = n_pad // tk

    # ---- zero-pad / cast (skipped when already aligned; cast fuses under jit) ----
    x_p = _pad2d(x, n_pad, fin_p, matmul_dtype)
    w_p = _pad2d(w.T, fin_p, fout_p, matmul_dtype)
    adj_p = _pad2d(adj, n_pad, n_pad, matmul_dtype)
    b_p = _pad2d(b.reshape(1, -1), 1, fout_p, f32)
    g_p = _pad2d(gamma.reshape(1, -1), 1, fout_p, f32)
    be_p = _pad2d(beta.reshape(1, -1), 1, fout_p, f32)

    # ---- 1) Linear, tiled over node rows (W + bias stay resident and are fetched once;
    #         tile W too if Fin*Fout ever grows past a few MiB) ----
    h = pl.pallas_call(
        _linear_kernel,
        out_shape=jax.ShapeDtypeStruct((n_pad, fout_p), matmul_dtype),
        grid=(nb,),
        in_specs=[
            pl.BlockSpec((tm, fin_p), lambda i: (i, 0)),
            pl.BlockSpec((fin_p, fout_p), lambda i: (0, 0)),
            pl.BlockSpec((1, fout_p), lambda i: (0, 0)),
        ],
        out_specs=pl.BlockSpec((tm, fout_p), lambda i: (i, 0)),
        compiler_params=pltpu.CompilerParams(
            dimension_semantics=("parallel",),
            vmem_limit_bytes=_VMEM_LIMIT),
    )(x_p, w_p, b_p)

    # ---- 2) adj @ h: large (tm, tk) slabs; when nk == 1 h's block index is constant so
    #         it is DMA'd exactly once; f32 scratch accumulator, bf16 y hand-off ----
    y, stats = pl.pallas_call(
        _aggregate_kernel,
        out_shape=(
            jax.ShapeDtypeStruct((n_pad, fout_p), matmul_dtype),  # y = adj @ h (bf16)
            jax.ShapeDtypeStruct((nb, 2, fout_p), f32),           # per-row-block sum/sumsq
        ),
        grid=(nb, nk),
        in_specs=[
            pl.BlockSpec((tm, tk), lambda i, k: (i, k)),          # adj tile (streamed)
            pl.BlockSpec((tk, fout_p), lambda i, k: (k, 0)),      # h tile
        ],
        out_specs=(
            pl.BlockSpec((tm, fout_p), lambda i, k: (i, 0)),
            pl.BlockSpec((1, 2, fout_p), lambda i, k: (i, 0, 0)),
        ),
        scratch_shapes=[pltpu.VMEM((tm, fout_p), f32)],
        compiler_params=pltpu.CompilerParams(
            dimension_semantics=("parallel", "arbitrary"),
            vmem_limit_bytes=_VMEM_LIMIT),
    )(adj_p, h)

    # ---- 3) finalize: BN with true-N divisor + affine + ReLU, tiled over rows ----
    # TODO(synk): BatchNorm1d running_mean/running_var state update is not materialized
    # (forward output uses batch statistics, matching training-mode semantics).
    out = pl.pallas_call(
        functools.partial(_bn_relu_kernel, inv_n=1.0 / n),
        out_shape=jax.ShapeDtypeStruct((n_pad, fout_p), f32),
        grid=(nb,),
        in_specs=[
            pl.BlockSpec((tm, fout_p), lambda i: (i, 0)),
            pl.BlockSpec((nb, 2, fout_p), lambda i: (0, 0, 0)),
            pl.BlockSpec((1, fout_p), lambda i: (0, 0)),
            pl.BlockSpec((1, fout_p), lambda i: (0, 0)),
        ],
        out_specs=pl.BlockSpec((tm, fout_p), lambda i: (i, 0)),
        compiler_params=pltpu.CompilerParams(
            dimension_semantics=("parallel",),
            vmem_limit_bytes=_VMEM_LIMIT),
    )(y, stats, g_p, be_p)

    return out[:n, :fout]


def normalize_adj(adj):
    """Symmetric normalization D^{-1/2} A D^{-1/2} (O(N^2) broadcasting, no diag matmuls)."""
    rowsum = adj.sum(axis=1)
    d_inv_sqrt = jnp.where(rowsum > 0, jax.lax.rsqrt(jnp.maximum(rowsum, 1e-30)), 0.0)
    return d_inv_sqrt[:, None] * adj * d_inv_sqrt[None, :]


if __name__ == "__main__":
    key = jax.random.PRNGKey(0)
    k_x, k_w, k_b, k_adj = jax.random.split(key, 4)

    num_nodes = 16
    in_features = 32
    out_features = 32

    # Node features.
    x = jax.random.normal(k_x, (num_nodes, in_features), dtype=jnp.float32)

    # nn.Linear-style deterministic init (uniform in +-1/sqrt(fan_in)).
    bound = 1.0 / (in_features ** 0.5)
    w = jax.random.uniform(k_w, (out_features, in_features),
                           minval=-bound, maxval=bound, dtype=jnp.float32)
    b = jax.random.uniform(k_b, (out_features,),
                           minval=-bound, maxval=bound, dtype=jnp.float32)

    # BatchNorm1d default affine params.
    gamma = jnp.ones((out_features,), dtype=jnp.float32)
    beta = jnp.zeros((out_features,), dtype=jnp.float32)

    # Random symmetric binary adjacency + self loops, symmetrically normalized.
    adj_raw = (jax.random.uniform(k_adj, (num_nodes, num_nodes)) > 0.7).astype(jnp.float32)
    adj_raw = jnp.maximum(adj_raw, adj_raw.T)
    adj = normalize_adj(adj_raw + jnp.eye(num_nodes, dtype=jnp.float32))

    out = jax.block_until_ready(gcn_layer(x, w, b, adj, gamma, beta))
    assert out.shape == (num_nodes, out_features)

    # Reference with the same bf16 rounding as the kernel pipeline (bf16 matmul inputs,
    # f32 accumulation, bf16 h and y hand-offs, f32 batch statistics).
    bf = lambda a: a.astype(jnp.bfloat16).astype(jnp.float32)
    h_ref = bf(bf(x) @ bf(w).T + b.reshape(1, -1))
    y_ref = bf(bf(adj) @ h_ref)
    mean_ref = y_ref.mean(axis=0, keepdims=True)
    var_ref = ((y_ref - mean_ref) ** 2).mean(axis=0, keepdims=True)
    ref = jnp.maximum((y_ref - mean_ref) / jnp.sqrt(var_ref + EPS)
                      * gamma.reshape(1, -1) + beta.reshape(1, -1), 0.0)
    assert jnp.allclose(out, ref, atol=2e-2, rtol=2e-2), (
        float(jnp.max(jnp.abs(out - ref))))

    print("KERNEL_OK")
</pallas_src>

<mosaic_0001>
module attributes {stable_mosaic.version = 11 : i64} {
  func.func @_linear_kernel(%arg0: i32, %arg1: memref<16x128xbf16, #tpu.memory_space<vmem>>, %arg2: memref<128x128xbf16, #tpu.memory_space<vmem>>, %arg3: memref<1x128xf32, #tpu.memory_space<vmem>>, %arg4: memref<16x128xbf16, #tpu.memory_space<vmem>>) attributes {dimension_semantics = [#tpu.dimension_semantics<parallel>], iteration_bounds = array<i64: 1>, scalar_prefetch = 0 : i64, scratch_operands = 0 : i64, tpu.core_type = #tpu.core_type<tc>, window_params = [{transform_indices = @transform_0, window_bounds = array<i64: 16, 128>}, {pipeline_mode = #tpu.pipeline_mode<synchronous>, transform_indices = @transform_1, window_bounds = array<i64: 128, 128>}, {pipeline_mode = #tpu.pipeline_mode<synchronous>, transform_indices = @transform_2, window_bounds = array<i64: 1, 128>}, {transform_indices = @transform_3, window_bounds = array<i64: 16, 128>}]} {
    %c0 = arith.constant 0 : index
    %c0_0 = arith.constant 0 : index
    %0 = vector.load %arg1[%c0, %c0_0] : memref<16x128xbf16, #tpu.memory_space<vmem>>, vector<16x128xbf16>
    %c0_1 = arith.constant 0 : index
    %c0_2 = arith.constant 0 : index
    %1 = vector.load %arg2[%c0_1, %c0_2] : memref<128x128xbf16, #tpu.memory_space<vmem>>, vector<128x128xbf16>
    %cst = arith.constant dense<0.000000e+00> : vector<16x128xf32>
    %2 = tpu.matmul %0, %1, %cst {dimension_numbers = #tpu.dot_dimension_numbers<[1], [0], [0], [1], [0, 0, 1, 1], [], []>} : vector<16x128xbf16>, vector<128x128xbf16>, vector<16x128xf32> -> vector<16x128xf32>
    %c0_3 = arith.constant 0 : index
    %c0_4 = arith.constant 0 : index
    %3 = vector.load %arg3[%c0_3, %c0_4] : memref<1x128xf32, #tpu.memory_space<vmem>>, vector<1x128xf32>
    %4 = vector.broadcast %3 : vector<1x128xf32> to vector<16x128xf32>
    %5 = arith.addf %2, %4 : vector<16x128xf32>
    %6 = arith.truncf %5 : vector<16x128xf32> to vector<16x128xbf16>
    %c0_5 = arith.constant 0 : index
    %c0_6 = arith.constant 0 : index
    %7 = vector.load %arg4[%c0_5, %c0_6] : memref<16x128xbf16, #tpu.memory_space<vmem>>, vector<16x128xbf16>
    tpu.vector_store %arg4[%c0_5, %c0_6], %6 {strides = array<i32>} : memref<16x128xbf16, #tpu.memory_space<vmem>>, vector<16x128xbf16>,
    return
  }
  func.func @transform_0(%arg0: i32) -> (i32, i32) {
    %c0_i32 = arith.constant 0 : i32
    %c0_i32_0 = arith.constant 0 : i32
    return %arg0, %c0_i32 : i32, i32
  }
  func.func @transform_1(%arg0: i32) -> (i32, i32) {
    %c0_i32 = arith.constant 0 : i32
    %c0_i32_0 = arith.constant 0 : i32
    %c0_i32_1 = arith.constant 0 : i32
    return %c0_i32, %c0_i32_0 : i32, i32
  }
  func.func @transform_2(%arg0: i32) -> (i32, i32) {
    %c0_i32 = arith.constant 0 : i32
    %c0_i32_0 = arith.constant 0 : i32
    %c0_i32_1 = arith.constant 0 : i32
    return %c0_i32, %c0_i32_0 : i32, i32
  }
  func.func @transform_3(%arg0: i32) -> (i32, i32) {
    %c0_i32 = arith.constant 0 : i32
    %c0_i32_0 = arith.constant 0 : i32
    return %arg0, %c0_i32 : i32, i32
  }
}

module attributes {stable_mosaic.version = 11 : i64} {
  func.func @_bn_relu_kernel(%arg0: i32, %arg1: memref<16x128xbf16, #tpu.memory_space<vmem>>, %arg2: memref<1x2x128xf32, #tpu.memory_space<vmem>>, %arg3: memref<1x128xf32, #tpu.memory_space<vmem>>, %arg4: memref<1x128xf32, #tpu.memory_space<vmem>>, %arg5: memref<16x128xf32, #tpu.memory_space<vmem>>) attributes {dimension_semantics = [#tpu.dimension_semantics<parallel>], iteration_bounds = array<i64: 1>, scalar_prefetch = 0 : i64, scratch_operands = 0 : i64, tpu.core_type = #tpu.core_type<tc>, window_params = [{transform_indices = @transform_0, window_bounds = array<i64: 16, 128>}, {pipeline_mode = #tpu.pipeline_mode<synchronous>, transform_indices = @transform_1, window_bounds = array<i64: 1, 2, 128>}, {pipeline_mode = #tpu.pipeline_mode<synchronous>, transform_indices = @transform_2, window_bounds = array<i64: 1, 128>}, {pipeline_mode = #tpu.pipeline_mode<synchronous>, transform_indices = @transform_3, window_bounds = array<i64: 1, 128>}, {transform_indices = @transform_4, window_bounds = array<i64: 16, 128>}]} {
    %c0 = arith.constant 0 : index
    %c0_0 = arith.constant 0 : index
    %c0_1 = arith.constant 0 : index
    %0 = vector.load %arg2[%c0, %c0_0, %c0_1] : memref<1x2x128xf32, #tpu.memory_space<vmem>>, vector<1x2x128xf32>
    %cst = arith.constant dense<0.000000e+00> : vector<2x128xf32>
    %1 = vector.multi_reduction <add>, %0, %cst [0] : vector<1x2x128xf32> to vector<2x128xf32>
    %2 = vector.extract_strided_slice %1 {offsets = [0, 0], sizes = [1, 128], strides = [1, 1]} : vector<2x128xf32> to vector<1x128xf32>
    %cst_2 = arith.constant 6.250000e-02 : f32
    %3 = vector.broadcast %cst_2 : f32 to vector<1x128xf32>
    %4 = arith.mulf %2, %3 : vector<1x128xf32>
    %5 = vector.extract_strided_slice %1 {offsets = [1, 0], sizes = [1, 128], strides = [1, 1]} : vector<2x128xf32> to vector<1x128xf32>
    %cst_3 = arith.constant 6.250000e-02 : f32
    %6 = vector.broadcast %cst_3 : f32 to vector<1x128xf32>
    %7 = arith.mulf %5, %6 : vector<1x128xf32>
    %8 = arith.mulf %4, %4 : vector<1x128xf32>
    %9 = arith.subf %7, %8 : vector<1x128xf32>
    %cst_4 = arith.constant 0.000000e+00 : f32
    %10 = vector.broadcast %cst_4 : f32 to vector<1x128xf32>
    %11 = arith.maximumf %9, %10 : vector<1x128xf32>
    %cst_5 = arith.constant 9.99999974E-6 : f32
    %12 = vector.broadcast %cst_5 : f32 to vector<1x128xf32>
    %13 = arith.addf %11, %12 : vector<1x128xf32>
    %14 = math.rsqrt %13 : vector<1x128xf32>
    %c0_6 = arith.constant 0 : index
    %c0_7 = arith.constant 0 : index
    %15 = vector.load %arg1[%c0_6, %c0_7] : memref<16x128xbf16, #tpu.memory_space<vmem>>, vector<16x128xbf16>
    %16 = arith.extf %15 : vector<16x128xbf16> to vector<16x128xf32>
    %17 = vector.broadcast %4 : vector<1x128xf32> to vector<16x128xf32>
    %18 = arith.subf %16, %17 : vector<16x128xf32>
    %19 = vector.broadcast %14 : vector<1x128xf32> to vector<16x128xf32>
    %20 = arith.mulf %18, %19 : vector<16x128xf32>
    %c0_8 = arith.constant 0 : index
    %c0_9 = arith.constant 0 : index
    %21 = vector.load %arg3[%c0_8, %c0_9] : memref<1x128xf32, #tpu.memory_space<vmem>>, vector<1x128xf32>
    %22 = vector.broadcast %21 : vector<1x128xf32> to vector<16x128xf32>
    %23 = arith.mulf %20, %22 : vector<16x128xf32>
    %c0_10 = arith.constant 0 : index
    %c0_11 = arith.constant 0 : index
    %24 = vector.load %arg4[%c0_10, %c0_11] : memref<1x128xf32, #tpu.memory_space<vmem>>, vector<1x128xf32>
    %25 = vector.broadcast %24 : vector<1x128xf32> to vector<16x128xf32>
    %26 = arith.addf %23, %25 : vector<16x128xf32>
    %cst_12 = arith.constant 0.000000e+00 : f32
    %27 = vector.broadcast %cst_12 : f32 to vector<16x128xf32>
    %28 = arith.maximumf %26, %27 : vector<16x128xf32>
    %c0_13 = arith.constant 0 : index
    %c0_14 = arith.constant 0 : index
    %29 = vector.load %arg5[%c0_13, %c0_14] : memref<16x128xf32, #tpu.memory_space<vmem>>, vector<16x128xf32>
    tpu.vector_store %arg5[%c0_13, %c0_14], %28 {strides = array<i32>} : memref<16x128xf32, #tpu.memory_space<vmem>>, vector<16x128xf32>,
    return
  }
  func.func @transform_0(%arg0: i32) -> (i32, i32) {
    %c0_i32 = arith.constant 0 : i32
    %c0_i32_0 = arith.constant 0 : i32
    return %arg0, %c0_i32 : i32, i32
  }
  func.func @transform_1(%arg0: i32) -> (i32, i32, i32) {
    %c0_i32 = arith.constant 0 : i32
    %c0_i32_0 = arith.constant 0 : i32
    %c0_i32_1 = arith.constant 0 : i32
    %c0_i32_2 = arith.constant 0 : i32
    return %c0_i32, %c0_i32_0, %c0_i32_1 : i32, i32, i32
  }
  func.func @transform_2(%arg0: i32) -> (i32, i32) {
    %c0_i32 = arith.constant 0 : i32
    %c0_i32_0 = arith.constant 0 : i32
    %c0_i32_1 = arith.constant 0 : i32
    return %c0_i32, %c0_i32_0 : i32, i32
  }
  func.func @transform_3(%arg0: i32) -> (i32, i32) {
    %c0_i32 = arith.constant 0 : i32
    %c0_i32_0 = arith.constant 0 : i32
    %c0_i32_1 = arith.constant 0 : i32
    return %c0_i32, %c0_i32_0 : i32, i32
  }
  func.func @transform_4(%arg0: i32) -> (i32, i32) {
    %c0_i32 = arith.constant 0 : i32
    %c0_i32_0 = arith.constant 0 : i32
    return %arg0, %c0_i32 : i32, i32
  }
}

module attributes {stable_mosaic.version = 11 : i64} {
  func.func @_aggregate_kernel(%arg0: i32, %arg1: i32, %arg2: memref<16x16xbf16, #tpu.memory_space<vmem>>, %arg3: memref<16x128xbf16, #tpu.memory_space<vmem>>, %arg4: memref<16x128xbf16, #tpu.memory_space<vmem>>, %arg5: memref<1x2x128xf32, #tpu.memory_space<vmem>>, %arg6: memref<16x128xf32, #tpu.memory_space<vmem>>) attributes {dimension_semantics = [#tpu.dimension_semantics<parallel>, #tpu.dimension_semantics<arbitrary>], iteration_bounds = array<i64: 1, 1>, scalar_prefetch = 0 : i64, scratch_operands = 1 : i64, tpu.core_type = #tpu.core_type<tc>, window_params = [{transform_indices = @transform_0, window_bounds = array<i64: 16, 16>}, {transform_indices = @transform_1, window_bounds = array<i64: 16, 128>}, {transform_indices = @transform_2, window_bounds = array<i64: 16, 128>}, {transform_indices = @transform_3, window_bounds = array<i64: 1, 2, 128>}]} {
    %c0_i32 = arith.constant 0 : i32
    %0 = arith.cmpi eq, %arg1, %c0_i32 : i32
    %1 = arith.extui %0 : i1 to i32
    %c0_i32_0 = arith.constant 0 : i32
    %2 = arith.cmpi ne, %1, %c0_i32_0 : i32
    scf.if %2 {
      %cst_10 = arith.constant 0.000000e+00 : f32
      %12 = vector.broadcast %cst_10 : f32 to vector<16x128xf32>
      %c0_11 = arith.constant 0 : index
      %c0_12 = arith.constant 0 : index
      %13 = vector.load %arg6[%c0_11, %c0_12] : memref<16x128xf32, #tpu.memory_space<vmem>>, vector<16x128xf32>
      tpu.vector_store %arg6[%c0_11, %c0_12], %12 {strides = array<i32>} : memref<16x128xf32, #tpu.memory_space<vmem>>, vector<16x128xf32>,
    } else {
    }
    %c0 = arith.constant 0 : index
    %c0_1 = arith.constant 0 : index
    %3 = vector.load %arg6[%c0, %c0_1] : memref<16x128xf32, #tpu.memory_space<vmem>>, vector<16x128xf32>
    %c0_2 = arith.constant 0 : index
    %c0_3 = arith.constant 0 : index
    %4 = vector.load %arg2[%c0_2, %c0_3] : memref<16x16xbf16, #tpu.memory_space<vmem>>, vector<16x16xbf16>
    %c0_4 = arith.constant 0 : index
    %c0_5 = arith.constant 0 : index
    %5 = vector.load %arg3[%c0_4, %c0_5] : memref<16x128xbf16, #tpu.memory_space<vmem>>, vector<16x128xbf16>
    %cst = arith.constant dense<0.000000e+00> : vector<16x128xf32>
    %6 = tpu.matmul %4, %5, %cst {dimension_numbers = #tpu.dot_dimension_numbers<[1], [0], [0], [1], [0, 0, 1, 1], [], []>} : vector<16x16xbf16>, vector<16x128xbf16>, vector<16x128xf32> -> vector<16x128xf32>
    %7 = arith.addf %3, %6 : vector<16x128xf32>
    %c0_6 = arith.constant 0 : index
    %c0_7 = arith.constant 0 : index
    %8 = vector.load %arg6[%c0_6, %c0_7] : memref<16x128xf32, #tpu.memory_space<vmem>>, vector<16x128xf32>
    tpu.vector_store %arg6[%c0_6, %c0_7], %7 {strides = array<i32>} : memref<16x128xf32, #tpu.memory_space<vmem>>, vector<16x128xf32>,
    %c0_i32_8 = arith.constant 0 : i32
    %9 = arith.cmpi eq, %arg1, %c0_i32_8 : i32
    %10 = arith.extui %9 : i1 to i32
    %c0_i32_9 = arith.constant 0 : i32
    %11 = arith.cmpi ne, %10, %c0_i32_9 : i32
    scf.if %11 {
      %c0_10 = arith.constant 0 : index
      %c0_11 = arith.constant 0 : index
      %12 = vector.load %arg6[%c0_10, %c0_11] : memref<16x128xf32, #tpu.memory_space<vmem>>, vector<16x128xf32>
      %cst_12 = arith.constant dense<0.000000e+00> : vector<128xf32>
      %13 = vector.multi_reduction <add>, %12, %cst_12 [0] : vector<16x128xf32> to vector<128xf32>
      %14 = vector.shape_cast %13 : vector<128xf32> to vector<1x128xf32>
      %c0_13 = arith.constant 0 : index
      %c0_14 = arith.constant 0 : index
      %c0_15 = arith.constant 0 : index
      %15 = vector.load %arg5[%c0_13, %c0_14, %c0_15] : memref<1x2x128xf32, #tpu.memory_space<vmem>>, vector<1x1x128xf32>
      %16 = vector.shape_cast %15 : vector<1x1x128xf32> to vector<1x128xf32>
      %17 = vector.shape_cast %14 : vector<1x128xf32> to vector<1x1x128xf32>
      tpu.vector_store %arg5[%c0_13, %c0_14, %c0_15], %17 {strides = array<i32>} : memref<1x2x128xf32, #tpu.memory_space<vmem>>, vector<1x1x128xf32>,
      %18 = arith.mulf %12, %12 : vector<16x128xf32>
      %cst_16 = arith.constant dense<0.000000e+00> : vector<128xf32>
      %19 = vector.multi_reduction <add>, %18, %cst_16 [0] : vector<16x128xf32> to vector<128xf32>
      %20 = vector.shape_cast %19 : vector<128xf32> to vector<1x128xf32>
      %c0_17 = arith.constant 0 : index
      %c1 = arith.constant 1 : index
      %c0_18 = arith.constant 0 : index
      %21 = vector.load %arg5[%c0_17, %c1, %c0_18] : memref<1x2x128xf32, #tpu.memory_space<vmem>>, vector<1x1x128xf32>
      %22 = vector.shape_cast %21 : vector<1x1x128xf32> to vector<1x128xf32>
      %23 = vector.shape_cast %20 : vector<1x128xf32> to vector<1x1x128xf32>
      tpu.vector_store %arg5[%c0_17, %c1, %c0_18], %23 {strides = array<i32>} : memref<1x2x128xf32, #tpu.memory_space<vmem>>, vector<1x1x128xf32>,
      %24 = arith.truncf %12 : vector<16x128xf32> to vector<16x128xbf16>
      %c0_19 = arith.constant 0 : index
      %c0_20 = arith.constant 0 : index
      %25 = vector.load %arg4[%c0_19, %c0_20] : memref<16x128xbf16, #tpu.memory_space<vmem>>, vector<16x128xbf16>
      tpu.vector_store %arg4[%c0_19, %c0_20], %24 {strides = array<i32>} : memref<16x128xbf16, #tpu.memory_space<vmem>>, vector<16x128xbf16>,
    } else {
    }
    return
  }
  func.func @transform_0(%arg0: i32, %arg1: i32) -> (i32, i32) {
    %c0_i32 = arith.constant 0 : i32
    return %arg0, %arg1 : i32, i32
  }
  func.func @transform_1(%arg0: i32, %arg1: i32) -> (i32, i32) {
    %c0_i32 = arith.constant 0 : i32
    %c0_i32_0 = arith.constant 0 : i32
    return %arg1, %c0_i32 : i32, i32
  }
  func.func @transform_2(%arg0: i32, %arg1: i32) -> (i32, i32) {
    %c0_i32 = arith.constant 0 : i32
    %c0_i32_0 = arith.constant 0 : i32
    return %arg0, %c0_i32 : i32, i32
  }
  func.func @transform_3(%arg0: i32, %arg1: i32) -> (i32, i32, i32) {
    %c0_i32 = arith.constant 0 : i32
    %c0_i32_0 = arith.constant 0 : i32
    %c0_i32_1 = arith.constant 0 : i32
    return %arg0, %c0_i32, %c0_i32_0 : i32, i32, i32
  }
}

</mosaic_0001>

<bundles_post_ra>
// kernel: gcn_layer.5
= control target key start
LH: loop header
LB: loop body
LE: loop exit
PB: predicated region body
PF: predicated region fallthrough
CT: control target
= control target key end

     0   :  { %s162_s0 = inlined_call_operand.vmem [shape: bf16[16,128], index: 0, kind: input, shape index: {}]   ;;  %s163_s1 = inlined_call_operand.vmem [shape: f32[1,2,128], index: 1, kind: input, shape index: {}]   ;;  %s164_s2 = inlined_call_operand.vmem [shape: f32[1,128], index: 2, kind: input, shape index: {}]   ;;  %s165_s3 = inlined_call_operand.vmem [shape: f32[1,128], index: 3, kind: input, shape index: {}]   ;;  %s166_s4 = inlined_call_operand.hbm [shape: f32[16,128], index: 4, kind: output, shape index: {}]  }
   0x1   :  { %v18_v0 = vld [vmem:[%s163_s1] sm:$0x3] }
   0x2   :  { %v20_v1 = vmul.f32 0.0625, %v18_v0 }
   0x3   :  { %9 = vsyncpa [#allocation3], 0  ;;  %v83_v10 = vld [vmem:[%s162_s0] sm:$0xff]   ;;  %s119_s21 = smov [#allocation2]   ;;  %s70_s25 = sshll.u32 %s166_s4, 4  ;;  %s71_s25 = int_to_ptr.hbm [resolvable:$true] %s70_s25 }
   0x4   :  { %v21_v2 = vmul.f32 %v20_v1, %v20_v1  ;;  %v84_v12 = vunpack.c.l.bf16 %v83_v10  ;;  %v42_v13 = vperm.slane %v20_v1, 0  ;;  %v85_v14 = vunpack.c.h.bf16 %v83_v10  ;;  %v89_v21 = vld [vmem:[%s164_s2] ss:$0 sm:$0xff]  ;;  %s68_s22 = sshll.u32 %s119_s21, 4  ;;  %s120_s2 = smov 128   ;;  %s69_s22 = int_to_ptr.vmem [resolvable:$true] %s68_s22 }
   0x5   :  { %v90_v23 = vld [vmem:[%s165_s3] ss:$0 sm:$0xff]  ;;  %s121_s26 = smov 8  }
   0x6   :  { %v23_v3 = vrot.slane %v21_v2, 7  ;;  %v43_v17 = vsub.f32 %v84_v12, %v42_v13  ;;  %v44_v18 = vsub.f32 %v85_v14, %v42_v13 }
   0x8   :  { %v25_v4 = vsub.f32 %v20_v1, %v23_v3 }
   0xa   :  { %v26_v5 = vmax.f32 %v25_v4, 0.0 }
   0xc   :  { %v27_v6 = vadd.f32 1e-05, %v26_v5 }
   0xe   :  { %91 = vrsqrt.f32 %v27_v6  ;;  %vm34_vm0 = vweird.f32 %v27_v6 }
  0x14   :  { %v92_v7 = vpop.eup %91 }
  0x15   :  { %v29_v8 = vmul.f32 %v92_v7, %v27_v6  ;;  %vm35_vm1 = vweird.f32 %v92_v7 }
  0x16   :  { %vm36_vm2 = vmor %vm34_vm0, %vm35_vm1 }
  0x17   :  { %v30_v9 = vmul.f32 %v92_v7, %v29_v8 }
  0x19   :  { %v31_v11 = vmul.f32 0.5, %v30_v9 }
  0x1b   :  { %v32_v15 = vsub.f32 1.5, %v31_v11 }
  0x1d   :  { %v33_v16 = vmul.f32 %v92_v7, %v32_v15 }
  0x1f   :  { %v37_v19 = vsel %vm36_vm2, %v92_v7, %v33_v16 }
  0x20   :  { %v45_v20 = vperm.slane %v37_v19, 1 }
  0x22   :  { %v46_v22 = vmul.f32 %v45_v20, %v43_v17  ;;  %v47_v24 = vmul.f32 %v45_v20, %v44_v18 }
  0x24   :  { %v52_v25 = vmul.f32 %v89_v21, %v46_v22  ;;  %v53_v26 = vmul.f32 %v89_v21, %v47_v24 }
  0x26   :  { %v58_v27 = vadd.f32 %v90_v23, %v52_v25  ;;  %v59_v28 = vadd.f32 %v90_v23, %v53_v26 }
  0x28   :  { %v60_v29 = vmax.f32 %v58_v27, 0.0  ;;  %v61_v30 = vmax.f32 %v59_v28, 0.0 }
  0x2a   :  { %62 = vst [vmem:[#allocation2] sm:$0xff] %v60_v29 }
  0x2b   :  { %63 = vst [vmem:[#allocation2 + $0x8] sm:$0xff] %v61_v30 }
  0x2c   :  { %76 = dma.vmem_to_hbm [thread:$0]  %s69_s22, 256, %s71_s25, [#allocation3], %s120_s2, %s120_s2, %s121_s26  }
  0x2d   :  { %117 = dma.done.wait [#allocation3], 256  }
  0x2e   :  { %118 = vsyncadd [#allocation3], 4294967040 }
  0x2f   :  { %81 = vsyncpa [#allocation3], 1 }

// kernel: gcn_layer.4
= control target key start
LH: loop header
LB: loop body
LE: loop exit
PB: predicated region body
PF: predicated region fallthrough
CT: control target
= control target key end

     0   :  { %vm37_vm0 = vcmask 130048   ;;  %s145_s1 = inlined_call_operand.vmem [shape: bf16[16,128], index: 1, kind: input, shape index: {}]   ;;  %s146_s0 = inlined_call_operand.vmem [shape: bf16[16,16], index: 0, kind: input, shape index: {}]   ;;  %s147_s2 = inlined_call_operand.vmem [shape: bf16[16,128], index: 2, kind: output, shape index: {0}]   ;;  %s148_s3 = inlined_call_operand.vmem [shape: f32[1,2,128], index: 3, kind: output, shape index: {1}]  }
   0x1   :  { %v104_v0 = vld [vmem:[%s145_s1] sm:$0xff] }
   0x2   :  { %v103_v1 = vld [vmem:[%s146_s0] sm:$0xff]  ;;  %48 = vmatpush.bf16.msra.mxu0 %v104_v0 }
   0x5   :  { %102 = vmatmul.msk.bf16.vlgmr.msra.gmra.mxu0 %vm37_vm0, %v103_v1 }
  0x82   :  { %v50_v2 = vpop.f32.mrf.mxu0 }
  0x83   :  { %v72_v4 = vmul.f32 %v50_v2, %v50_v2 }
  0x8a   :  { %v52_v3 = vpop.f32.mrf.mxu0 }
  0x8b   :  { %v64_v5 = vadd.f32 %v52_v3, %v50_v2  ;;  %v73_v6 = vmul.f32 %v52_v3, %v52_v3  ;;  %v108_v7 = vpack.c.bf16 %v52_v3, %v50_v2 }
  0x8d   :  { %v65_v8 = vrot.slane %v64_v5, 4  ;;  %v74_v9 = vadd.f32 %v73_v6, %v72_v4  ;;  %109 = vst [vmem:[%s147_s2] sm:$0xff] %v108_v7  }
  0x8f   :  { %v66_v10 = vadd.f32 %v65_v8, %v64_v5  ;;  %v75_v11 = vrot.slane %v74_v9, 4 }
  0x91   :  { %v67_v12 = vrot.slane %v66_v10, 2  ;;  %v76_v13 = vadd.f32 %v75_v11, %v74_v9 }
  0x93   :  { %v68_v14 = vadd.f32 %v67_v12, %v66_v10  ;;  %v77_v15 = vrot.slane %v76_v13, 2 }
  0x95   :  { %v69_v16 = vrot.slane %v68_v14, 1  ;;  %v78_v17 = vadd.f32 %v77_v15, %v76_v13 }
  0x97   :  { %v70_v18 = vadd.f32 %v69_v16, %v68_v14  ;;  %v79_v19 = vrot.slane %v78_v17, 1 }
  0x99   :  { %71 = vst [vmem:[%s148_s3] sm:$0x1] %v70_v18  ;;  %v80_v20 = vadd.f32 %v79_v19, %v78_v17 }
  0x9b   :  { %81 = vst [vmem:[%s148_s3 + $0x1] sm:$0x1] %v80_v20 }

// kernel: gcn_layer.3
= control target key start
LH: loop header
LB: loop body
LE: loop exit
PB: predicated region body
PF: predicated region fallthrough
CT: control target
= control target key end

     0   :  { %s216_s1 = inlined_call_operand.vmem [shape: bf16[128,128], index: 1, kind: input, shape index: {}]   ;;  %s217_s2 = inlined_call_operand.vmem [shape: f32[1,128], index: 2, kind: input, shape index: {}]   ;;  %s218_s0 = inlined_call_operand.vmem [shape: bf16[16,128], index: 0, kind: input, shape index: {}]   ;;  %s219_s3 = inlined_call_operand.vmem [shape: bf16[16,128], index: 3, kind: output, shape index: {}]  }
   0x1   :  { %v156_v0 = vld [vmem:[%s216_s1 + $0x38] sm:$0xff]  ;;  %v155_v1 = vld [vmem:[%s216_s1 + $0x30] sm:$0xff]  ;;  %v154_v2 = vld [vmem:[%s216_s1 + $0x28] sm:$0xff] }
   0x2   :  { %90 = vmatpush.bf16.msra.mxu0 %v156_v0  ;;  %v153_v3 = vld [vmem:[%s216_s1 + $0x20] sm:$0xff]  ;;  %v152_v4 = vld [vmem:[%s216_s1 + $0x18] sm:$0xff]  ;;  %v151_v5 = vld [vmem:[%s216_s1 + $0x10] sm:$0xff] }
   0x3   :  { %v150_v6 = vld [vmem:[%s216_s1 + $0x8] sm:$0xff]  ;;  %v149_v7 = vld [vmem:[%s216_s1] sm:$0xff] }
   0x4   :  { %v148_v8 = vld [vmem:[%s218_s0] sm:$0xff] }
   0x5   :  { %v162_v10 = vld [vmem:[%s217_s2] ss:$0 sm:$0xff] }
   0x6   :  { %91 = vmatpush.bf16.msra.mxu0 %v155_v1 }
   0xa   :  { %92 = vmatpush.bf16.msra.mxu0 %v154_v2 }
   0xe   :  { %93 = vmatpush.bf16.msra.mxu0 %v153_v3 }
  0x12   :  { %94 = vmatpush.bf16.msra.mxu0 %v152_v4 }
  0x16   :  { %95 = vmatpush.bf16.msra.mxu0 %v151_v5 }
  0x1a   :  { %96 = vmatpush.bf16.msra.mxu0 %v150_v6 }
  0x1e   :  { %97 = vmatpush.bf16.msra.mxu0 %v149_v7 }
  0x21   :  { %98 = vmatmul.bf16.vlgmr.msra.gmra.mxu0 %v148_v8 }
  0x9e   :  { %v99_v9 = vpop.f32.mrf.mxu0 }
  0x9f   :  { %v100_v12 = vadd.f32 %v162_v10, %v99_v9 }
  0xa6   :  { %v101_v11 = vpop.f32.mrf.mxu0 }
  0xa7   :  { %v102_v13 = vadd.f32 %v162_v10, %v101_v11 }
  0xa9   :  { %v160_v14 = vpack.c.bf16 %v102_v13, %v100_v12 }
  0xab   :  { %161 = vst [vmem:[%s219_s3] sm:$0xff] %v160_v14  }

</bundles_post_ra>
